<compile_context>
chip_gen: v7x
topology: tpu7x:2x2x1
jax: 0.10.0
libtpu: 0.0.40
codegen_flags: <defaults>
</compile_context>

<pallas_src>
import jax
import jax.numpy as jnp
from jax.experimental import pallas as pl
from jax.experimental.pallas import tpu as pltpu


def _round_up(x: int, m: int) -> int:
    return (x + m - 1) // m * m


def gcn_kernel(adj_ref, x_ref, w_ref, o_ref, acc_ref):
    """adj_ref: [TM, TK]  x_ref: [TK, IN_PAD]  w_ref: [IN_PAD, OUT_PAD]
    o_ref: [TM, OUT_PAD]  acc_ref: VMEM [TM, IN_PAD] f32."""
    k = pl.program_id(1)

    @pl.when(k == 0)
    def _():
        acc_ref[...] = jnp.zeros_like(acc_ref)

    # agg_tile += adj_tile @ x_aug_tile   (bf16 MXU, f32 accumulate)
    acc_ref[...] += jnp.dot(
        adj_ref[...], x_ref[...], preferred_element_type=jnp.float32
    )

    @pl.when(k == pl.num_programs(1) - 1)
    def _():
        # out_tile = agg_tile @ [[W.T],[b]]  (bias folded via ones-column of x)
        o_ref[...] = jnp.dot(
            acc_ref[...].astype(w_ref.dtype),
            w_ref[...],
            preferred_element_type=jnp.float32,
        ).astype(o_ref.dtype)


def graph_convolution(x, adj, weight, bias, *, tile_n=256,
                      compute_dtype=jnp.bfloat16):
    """x:[N,in], adj:[N,N], weight:[out,in], bias:[out] -> [N,out]"""
    n, in_dims = x.shape
    out_dims = weight.shape[0]
    out_dtype = x.dtype

    # Fold bias into the projection via an appended ones-column:
    #   adj @ (x W^T + b) == (adj @ [x, 1]) @ [[W^T], [b]]
    x_aug = jnp.concatenate([x, jnp.ones((n, 1), x.dtype)], axis=1)   # [N, in+1]
    w_aug = jnp.concatenate(
        [weight.T.astype(x.dtype), bias.reshape(1, out_dims).astype(x.dtype)],
        axis=0,
    )                                                                  # [in+1, out]

    k_dims = in_dims + 1
    in_pad = _round_up(k_dims, 128)      # lane-dense feature dim
    out_pad = _round_up(out_dims, 128)   # lane-dense output dim
    tile = min(int(tile_n), _round_up(n, 128))   # multiple of 128 (and of 16)
    n_pad = _round_up(n, tile)

    # Zero-pad + cast MXU inputs to bf16 (f32 accumulation inside the kernel).
    adj_p = jnp.zeros((n_pad, n_pad), compute_dtype).at[:n, :n].set(
        adj.astype(compute_dtype))
    x_p = jnp.zeros((n_pad, in_pad), compute_dtype).at[:n, :k_dims].set(
        x_aug.astype(compute_dtype))
    w_p = jnp.zeros((in_pad, out_pad), compute_dtype).at[:k_dims, :out_dims].set(
        w_aug.astype(compute_dtype))

    grid = (n_pad // tile, n_pad // tile)

    cbytes = jnp.dtype(compute_dtype).itemsize
    obytes = jnp.dtype(out_dtype).itemsize
    cost = pl.CostEstimate(
        flops=2 * n_pad * n_pad * in_pad + 2 * n_pad * in_pad * out_pad,
        transcendentals=0,
        bytes_accessed=(n_pad * n_pad * cbytes          # adj
                        + n_pad * in_pad * cbytes       # x_aug
                        + in_pad * out_pad * cbytes     # w_aug
                        + n_pad * out_pad * obytes),    # out
    )

    out_p = pl.pallas_call(
        gcn_kernel,
        out_shape=jax.ShapeDtypeStruct((n_pad, out_pad), out_dtype),
        grid_spec=pltpu.PrefetchScalarGridSpec(
            num_scalar_prefetch=0,
            grid=grid,
            in_specs=[
                pl.BlockSpec((tile, tile), lambda i, k: (i, k)),      # adj
                pl.BlockSpec((tile, in_pad), lambda i, k: (k, 0)),    # x_aug
                pl.BlockSpec((in_pad, out_pad), lambda i, k: (0, 0)),  # w_aug (resident)
            ],
            out_specs=pl.BlockSpec((tile, out_pad), lambda i, k: (i, 0)),
            scratch_shapes=[pltpu.VMEM((tile, in_pad), jnp.float32)],
        ),
        compiler_params=pltpu.CompilerParams(
            dimension_semantics=("parallel", "arbitrary"),
        ),
        cost_estimate=cost,
    )(adj_p, x_p, w_p)

    return out_p[:n, :out_dims]


if __name__ == "__main__":
    # Small deterministic example: N=16 nodes, in_dims=8, out_dims=32.
    N, IN_DIMS, OUT_DIMS = 16, 8, 32

    key = jax.random.PRNGKey(0)
    kx, kadj, kw, kb = jax.random.split(key, 4)

    x = jax.random.normal(kx, (N, IN_DIMS), dtype=jnp.float32)

    # Symmetric row-normalized-ish adjacency (dense representation).
    a_raw = (jax.random.uniform(kadj, (N, N)) > 0.7).astype(jnp.float32)
    adj = a_raw + a_raw.T + jnp.eye(N, dtype=jnp.float32)
    adj = adj / jnp.sum(adj, axis=1, keepdims=True)

    # nn.Linear(in_dims, out_dims): weight [out, in], bias [out].
    bound = 1.0 / (IN_DIMS ** 0.5)
    weight = jax.random.uniform(kw, (OUT_DIMS, IN_DIMS), minval=-bound, maxval=bound)
    bias = jax.random.uniform(kb, (OUT_DIMS,), minval=-bound, maxval=bound)

    out = graph_convolution(x, adj, weight, bias)
    out = jax.block_until_ready(out)

    # Reference check in plain JAX (f32). Kernel uses bf16 MXU inputs with
    # f32 accumulation -> relaxed tolerance.
    ref = adj @ (x @ weight.T + bias)
    assert out.shape == (N, OUT_DIMS)
    assert jnp.allclose(out, ref, atol=2e-2, rtol=2e-2)

    print("KERNEL_OK")
</pallas_src>

<mosaic_0001>
module attributes {stable_mosaic.version = 11 : i64} {
  func.func @gcn_kernel(%arg0: i32, %arg1: i32, %arg2: memref<128x128xbf16, #tpu.memory_space<vmem>>, %arg3: memref<128x128xbf16, #tpu.memory_space<vmem>>, %arg4: memref<128x128xbf16, #tpu.memory_space<vmem>>, %arg5: memref<128x128xf32, #tpu.memory_space<vmem>>, %arg6: memref<128x128xf32, #tpu.memory_space<vmem>>) attributes {dimension_semantics = [#tpu.dimension_semantics<parallel>, #tpu.dimension_semantics<arbitrary>], iteration_bounds = array<i64: 1, 1>, scalar_prefetch = 0 : i64, scratch_operands = 1 : i64, tpu.core_type = #tpu.core_type<tc>, window_params = [{transform_indices = @transform_0, window_bounds = array<i64: 128, 128>}, {transform_indices = @transform_1, window_bounds = array<i64: 128, 128>}, {pipeline_mode = #tpu.pipeline_mode<synchronous>, transform_indices = @transform_2, window_bounds = array<i64: 128, 128>}, {transform_indices = @transform_3, window_bounds = array<i64: 128, 128>}]} {
    %c0_i32 = arith.constant 0 : i32
    %0 = arith.cmpi eq, %arg1, %c0_i32 : i32
    %1 = arith.extui %0 : i1 to i32
    %c0_i32_0 = arith.constant 0 : i32
    %2 = arith.cmpi ne, %1, %c0_i32_0 : i32
    scf.if %2 {
      %cst_10 = arith.constant 0.000000e+00 : f32
      %12 = vector.broadcast %cst_10 : f32 to vector<128x128xf32>
      %c0_11 = arith.constant 0 : index
      %c0_12 = arith.constant 0 : index
      %13 = vector.load %arg6[%c0_11, %c0_12] : memref<128x128xf32, #tpu.memory_space<vmem>>, vector<128x128xf32>
      tpu.vector_store %arg6[%c0_11, %c0_12], %12 {strides = array<i32>} : memref<128x128xf32, #tpu.memory_space<vmem>>, vector<128x128xf32>,
    } else {
    }
    %c0 = arith.constant 0 : index
    %c0_1 = arith.constant 0 : index
    %3 = vector.load %arg6[%c0, %c0_1] : memref<128x128xf32, #tpu.memory_space<vmem>>, vector<128x128xf32>
    %c0_2 = arith.constant 0 : index
    %c0_3 = arith.constant 0 : index
    %4 = vector.load %arg2[%c0_2, %c0_3] : memref<128x128xbf16, #tpu.memory_space<vmem>>, vector<128x128xbf16>
    %c0_4 = arith.constant 0 : index
    %c0_5 = arith.constant 0 : index
    %5 = vector.load %arg3[%c0_4, %c0_5] : memref<128x128xbf16, #tpu.memory_space<vmem>>, vector<128x128xbf16>
    %cst = arith.constant dense<0.000000e+00> : vector<128x128xf32>
    %6 = tpu.matmul %4, %5, %cst {dimension_numbers = #tpu.dot_dimension_numbers<[1], [0], [0], [1], [0, 0, 1, 1], [], []>} : vector<128x128xbf16>, vector<128x128xbf16>, vector<128x128xf32> -> vector<128x128xf32>
    %7 = arith.addf %3, %6 : vector<128x128xf32>
    %c0_6 = arith.constant 0 : index
    %c0_7 = arith.constant 0 : index
    %8 = vector.load %arg6[%c0_6, %c0_7] : memref<128x128xf32, #tpu.memory_space<vmem>>, vector<128x128xf32>
    tpu.vector_store %arg6[%c0_6, %c0_7], %7 {strides = array<i32>} : memref<128x128xf32, #tpu.memory_space<vmem>>, vector<128x128xf32>,
    %c0_i32_8 = arith.constant 0 : i32
    %9 = arith.cmpi eq, %arg1, %c0_i32_8 : i32
    %10 = arith.extui %9 : i1 to i32
    %c0_i32_9 = arith.constant 0 : i32
    %11 = arith.cmpi ne, %10, %c0_i32_9 : i32
    scf.if %11 {
      %c0_10 = arith.constant 0 : index
      %c0_11 = arith.constant 0 : index
      %12 = vector.load %arg6[%c0_10, %c0_11] : memref<128x128xf32, #tpu.memory_space<vmem>>, vector<128x128xf32>
      %13 = arith.truncf %12 : vector<128x128xf32> to vector<128x128xbf16>
      %c0_12 = arith.constant 0 : index
      %c0_13 = arith.constant 0 : index
      %14 = vector.load %arg4[%c0_12, %c0_13] : memref<128x128xbf16, #tpu.memory_space<vmem>>, vector<128x128xbf16>
      %cst_14 = arith.constant dense<0.000000e+00> : vector<128x128xf32>
      %15 = tpu.matmul %13, %14, %cst_14 {dimension_numbers = #tpu.dot_dimension_numbers<[1], [0], [0], [1], [0, 0, 1, 1], [], []>} : vector<128x128xbf16>, vector<128x128xbf16>, vector<128x128xf32> -> vector<128x128xf32>
      %c0_15 = arith.constant 0 : index
      %c0_16 = arith.constant 0 : index
      %16 = vector.load %arg5[%c0_15, %c0_16] : memref<128x128xf32, #tpu.memory_space<vmem>>, vector<128x128xf32>
      tpu.vector_store %arg5[%c0_15, %c0_16], %15 {strides = array<i32>} : memref<128x128xf32, #tpu.memory_space<vmem>>, vector<128x128xf32>,
    } else {
    }
    return
  }
  func.func @transform_0(%arg0: i32, %arg1: i32) -> (i32, i32) {
    %c0_i32 = arith.constant 0 : i32
    return %arg0, %arg1 : i32, i32
  }
  func.func @transform_1(%arg0: i32, %arg1: i32) -> (i32, i32) {
    %c0_i32 = arith.constant 0 : i32
    %c0_i32_0 = arith.constant 0 : i32
    return %arg1, %c0_i32 : i32, i32
  }
  func.func @transform_2(%arg0: i32, %arg1: i32) -> (i32, i32) {
    %c0_i32 = arith.constant 0 : i32
    %c0_i32_0 = arith.constant 0 : i32
    %c0_i32_1 = arith.constant 0 : i32
    return %c0_i32, %c0_i32_0 : i32, i32
  }
  func.func @transform_3(%arg0: i32, %arg1: i32) -> (i32, i32) {
    %c0_i32 = arith.constant 0 : i32
    %c0_i32_0 = arith.constant 0 : i32
    return %arg0, %c0_i32 : i32, i32
  }
}

</mosaic_0001>

<bundles_post_ra>
// kernel: tpu_custom_call.1
= control target key start
LH: loop header
LB: loop body
LE: loop exit
PB: predicated region body
PF: predicated region fallthrough
CT: control target
= control target key end

     0   :  { %8 = vsyncpa [#allocation4], 0  ;;  %s910_s0 = inlined_call_operand.hbm [shape: bf16[128,128], index: 0, kind: input, shape index: {}]   ;;  %s911_s1 = inlined_call_operand.hbm [shape: bf16[128,128], index: 1, kind: input, shape index: {}]   ;;  %s912_s2 = inlined_call_operand.hbm [shape: bf16[128,128], index: 2, kind: input, shape index: {}]   ;;  %s913_s3 = inlined_call_operand.hbm [shape: f32[128,128], index: 3, kind: output, shape index: {}]  }
   0x1   :  { %9 = vsyncpa [#allocation7], 0 }
   0x2   :  { %10 = vsyncpa [#allocation5], 0  ;;  %s818_s12 = smov [#allocation6]   ;;  %s819_s14 = smov [#allocation3]  }
   0x3   :  { %s28_s13 = sshll.u32 %s818_s12, 4  ;;  %s16_s15 = sshll.u32 %s819_s14, 4  ;;  %s29_s13 = int_to_ptr.vmem [resolvable:$true] %s28_s13  ;;  %s846_s15 = int_to_ptr.vmem [resolvable:$true] %s16_s15 }
   0x4   :  { %s724_s18 = scalar_lea.hbm %s911_s1, 1024 }
   0x5   :  { %p725_p0 = scmp.ne.s32.totalorder %s911_s1, %s724_s18  ;;  %p728_p1 = scmp.lt.u32.totalorder %s724_s18, %s911_s1 }
   0x7   :  { %p730_p2 = pnand %p728_p1, %p725_p0 }
   0x9   :  { %733 = shalt.err (!%p730_p2)
}
   0xa   :  { %s734_s23 = scalar_lea.vmem %s29_s13, 1024  ;;  %p739_p4 = scmp.lt.s32.totalorder %s29_s13, %s29_s13 }
   0xb   :  { %p735_p3 = scmp.ne.s32.totalorder %s29_s13, %s734_s23  ;;  %p740_p5 = scmp.lt.s32.totalorder %s734_s23, %s734_s23 }
   0xd   :  { %p741_p6 = por %p740_p5, %p739_p4 }
   0xf   :  { %p742_p7 = pnand %p741_p6, %p735_p3 }
  0x11   :  { %745 = shalt.err (!%p742_p7)
}
  0x12   :  { %s820_s24 = smov 64   ;;  %s821_s25 = smov 4  }
  0x13   :  { %34 = dma.hbm_to_vmem [thread:$0]  %s911_s1, 1024, %s29_s13, [#allocation7], %s820_s24, %s820_s24, %s821_s25  }
  0x14   :  { %s746_s30 = scalar_lea.hbm %s910_s0, 1024 }
  0x15   :  { %p747_p8 = scmp.ne.s32.totalorder %s910_s0, %s746_s30  ;;  %p750_p9 = scmp.lt.u32.totalorder %s746_s30, %s910_s0 }
  0x17   :  { %p752_p10 = pnand %p750_p9, %p747_p8 }
  0x19   :  { %755 = shalt.err (!%p752_p10)
}
  0x1a   :  { %s756_s8 = scalar_lea.vmem %s846_s15, 1024  ;;  %p761_p12 = scmp.lt.s32.totalorder %s846_s15, %s846_s15 }
  0x1b   :  { %p757_p11 = scmp.ne.s32.totalorder %s846_s15, %s756_s8  ;;  %p762_p13 = scmp.lt.s32.totalorder %s756_s8, %s756_s8 }
  0x1d   :  { %p763_p0 = por %p762_p13, %p761_p12 }
  0x1f   :  { %p764_p1 = pnand %p763_p0, %p757_p11 }
  0x21   :  { %767 = shalt.err (!%p764_p1)
}
  0x22   :  { %22 = dma.hbm_to_vmem [thread:$0]  %s910_s0, 1024, %s846_s15, [#allocation4], %s820_s24, %s820_s24, %s821_s25  }
  0x23   :  { %s822_s10 = smov [#allocation8]   ;;  %s768_s14 = scalar_lea.hbm %s912_s2, 1024 }
  0x24   :  { %s40_s11 = sshll.u32 %s822_s10, 4  ;;  %p769_p2 = scmp.ne.s32.totalorder %s912_s2, %s768_s14  ;;  %s41_s11 = int_to_ptr.vmem [resolvable:$true] %s40_s11 }
  0x25   :  { %p772_p3 = scmp.lt.u32.totalorder %s768_s14, %s912_s2 }
  0x27   :  { %p774_p4 = pnand %p772_p3, %p769_p2 }
  0x29   :  { %777 = shalt.err (!%p774_p4)
}
  0x2a   :  { %s778_s20 = scalar_lea.vmem %s41_s11, 1024  ;;  %p783_p6 = scmp.lt.s32.totalorder %s41_s11, %s41_s11 }
  0x2b   :  { %p779_p5 = scmp.ne.s32.totalorder %s41_s11, %s778_s20  ;;  %p784_p7 = scmp.lt.s32.totalorder %s778_s20, %s778_s20 }
  0x2d   :  { %p785_p8 = por %p784_p7, %p783_p6 }
  0x2f   :  { %p786_p9 = pnand %p785_p8, %p779_p5 }
  0x31   :  { %789 = shalt.err (!%p786_p9)
}
  0x32   :  { %46 = dma.hbm_to_vmem [thread:$0]  %s912_s2, 1024, %s41_s11, [#allocation7], %s820_s24, %s820_s24, %s821_s25  }
  0x33   :  { %812 = dma.done.wait [#allocation4], 1024  }
  0x34   :  { %813 = vsyncadd [#allocation4], 4294966272 }
  0x35   :  { %814 = dma.done.wait [#allocation7], 2048  }
  0x36   :  { %815 = vsyncadd [#allocation7], 4294965248  ;;  %v700_v0 = vld [vmem:[#allocation6] sm:$0xff]   ;;  %v701_v1 = vld [vmem:[#allocation6 + $0x8] sm:$0xff]   ;;  %s823_s2 = smov [#allocation9]  }
  0x37   :  { %628 = vmatprep.subr.bf16.mxu0 %v700_v0  ;;  %v702_v2 = vld [vmem:[#allocation6 + $0x10] sm:$0xff]   ;;  %v703_v3 = vld [vmem:[#allocation6 + $0x18] sm:$0xff]   ;;  %v708_v4 = vld [vmem:[#allocation3] sm:$0xff]   ;;  %s559_s21 = sshll.u32 %s823_s2, 4  ;;  %s560_s21 = int_to_ptr.vmem [resolvable:$true] %s559_s21 }
  0x38   :  { %629 = vmatpush3.bf16.msra.mxu0 %v700_v0  ;;  %644 = vmatprep.mubr.bf16.mxu0 %v708_v4  ;;  %v704_v5 = vld [vmem:[#allocation6 + $0x20] sm:$0xff]   ;;  %v705_v6 = vld [vmem:[#allocation6 + $0x28] sm:$0xff]   ;;  %v706_v9 = vld [vmem:[#allocation6 + $0x30] sm:$0xff]   ;;  %s790_s22 = scalar_lea.vmem %s560_s21, 2048  ;;  %p795_p11 = scmp.lt.s32.totalorder %s560_s21, %s560_s21 }
  0x39   :  { %630 = vmatprep.subr.bf16.mxu0 %v701_v1  ;;  %v716_v7 = vld [vmem:[#allocation8] sm:$0xff]   ;;  %v717_v8 = vld [vmem:[#allocation8 + $0x8] sm:$0xff]   ;;  %v718_v10 = vld [vmem:[#allocation8 + $0x10] sm:$0xff]   ;;  %p791_p10 = scmp.ne.s32.totalorder %s560_s21, %s790_s22  ;;  %p796_p12 = scmp.lt.s32.totalorder %s790_s22, %s790_s22 }
  0x3a   :  { %660 = vmatprep.subr.bf16.mxu1 %v716_v7  ;;  %v707_v11 = vld [vmem:[#allocation6 + $0x38] sm:$0xff]   ;;  %v720_v13 = vld [vmem:[#allocation8 + $0x20] sm:$0xff]   ;;  %v709_v14 = vld [vmem:[#allocation3 + $0x8] sm:$0xff]  }
  0x3b   :  { %661 = vmatpush3.bf16.msra.mxu1 %v716_v7  ;;  %v719_v12 = vld [vmem:[#allocation8 + $0x18] sm:$0xff]   ;;  %v710_v15 = vld [vmem:[#allocation3 + $0x10] sm:$0xff]   ;;  %v721_v16 = vld [vmem:[#allocation8 + $0x28] sm:$0xff]   ;;  %p797_p13 = por %p796_p12, %p795_p11 }
  0x3c   :  { %631 = vmatpush3.bf16.msra.mxu0 %v701_v1  ;;  %662 = vmatprep.subr.bf16.mxu1 %v717_v8  ;;  %v722_v17 = vld [vmem:[#allocation8 + $0x30] sm:$0xff]   ;;  %v711_v18 = vld [vmem:[#allocation3 + $0x18] sm:$0xff]   ;;  %v712_v19 = vld [vmem:[#allocation3 + $0x20] sm:$0xff]  }
  0x3d   :  { %632 = vmatprep.subr.bf16.mxu0 %v702_v2  ;;  %v713_v20 = vld [vmem:[#allocation3 + $0x28] sm:$0xff]   ;;  %v714_v21 = vld [vmem:[#allocation3 + $0x30] sm:$0xff]   ;;  %v715_v22 = vld [vmem:[#allocation3 + $0x38] sm:$0xff]   ;;  %p798_p0 = pnand %p797_p13, %p791_p10 }
  0x3e   :  { %v723_v23 = vld [vmem:[#allocation8 + $0x38] sm:$0xff]  }
  0x3f   :  { %663 = vmatpush3.bf16.msra.mxu1 %v717_v8 }
  0x40   :  { %633 = vmatpush3.bf16.msra.mxu0 %v702_v2  ;;  %664 = vmatprep.subr.bf16.mxu1 %v718_v10 }
  0x41   :  { %634 = vmatprep.subr.bf16.mxu0 %v703_v3 }
  0x43   :  { %665 = vmatpush3.bf16.msra.mxu1 %v718_v10 }
  0x44   :  { %635 = vmatpush3.bf16.msra.mxu0 %v703_v3  ;;  %666 = vmatprep.subr.bf16.mxu1 %v719_v12 }
  0x45   :  { %636 = vmatprep.subr.bf16.mxu0 %v704_v5 }
  0x47   :  { %667 = vmatpush3.bf16.msra.mxu1 %v719_v12 }
  0x48   :  { %637 = vmatpush3.bf16.msra.mxu0 %v704_v5  ;;  %668 = vmatprep.subr.bf16.mxu1 %v720_v13 }
  0x49   :  { %638 = vmatprep.subr.bf16.mxu0 %v705_v6 }
  0x4b   :  { %669 = vmatpush3.bf16.msra.mxu1 %v720_v13 }
  0x4c   :  { %639 = vmatpush3.bf16.msra.mxu0 %v705_v6  ;;  %670 = vmatprep.subr.bf16.mxu1 %v721_v16 }
  0x4d   :  { %640 = vmatprep.subr.bf16.mxu0 %v706_v9 }
  0x4f   :  { %671 = vmatpush3.bf16.msra.mxu1 %v721_v16 }
  0x50   :  { %641 = vmatpush3.bf16.msra.mxu0 %v706_v9  ;;  %672 = vmatprep.subr.bf16.mxu1 %v722_v17 }
  0x51   :  { %642 = vmatprep.subr.bf16.mxu0 %v707_v11 }
  0x53   :  { %673 = vmatpush3.bf16.msra.mxu1 %v722_v17 }
  0x54   :  { %643 = vmatpush3.bf16.msra.mxu0 %v707_v11  ;;  %674 = vmatprep.subr.bf16.mxu1 %v723_v23 }
  0x57   :  { %645 = vmatmul.mubr.bf16.vlgmr.msra.gmra.mrb[0].mxu0 %v709_v14  ;;  %675 = vmatpush3.bf16.msra.mxu1 %v723_v23 }
  0x58   :  { %648 = vmatprep.mubr.bf16.mxu0 %v710_v15 }
  0x5f   :  { %649 = vmatmul.mubr.bf16.gmra.mrb[4].mxu0 %v711_v18 }
  0x60   :  { %652 = vmatprep.mubr.bf16.mxu0 %v712_v19 }
  0x67   :  { %653 = vmatmul.mubr.bf16.gmra.mrb[8].mxu0 %v713_v20 }
  0x68   :  { %656 = vmatprep.mubr.bf16.mxu0 %v714_v21 }
  0x6f   :  { %657 = vmatmul.mubr.bf16.gmra.mrb[12].mxu0 %v715_v22 }
 0x12a   :  { %v646_v24 = vpop.f32.mrb[0].mxu0 }
 0x12b   :  { %v255_v25 = vpop.f32.mrb[1].mxu0 }
 0x12c   :  { %v647_v26 = vpop.f32.mrb[2].mxu0 }
 0x12d   :  { %v370_v27 = vpack.c.bf16 %v647_v26, %v646_v24  ;;  %v258_v28 = vpop.f32.mrb[3].mxu0 }
 0x12e   :  { %v369_v29 = vpack.c.bf16 %v258_v28, %v255_v25 }
 0x130   :  { %676 = vmatprep.mubr.bf16.mxu1 %v369_v29 }
 0x131   :  { %677 = vmatmul.mubr.bf16.vlgmr.msra.gmra.mrb[0].mxu1 %v370_v27 }
 0x132   :  { %v650_v30 = vpop.f32.mrb[4].mxu0 }
 0x133   :  { %v271_v31 = vpop.f32.mrb[5].mxu0 }
 0x134   :  { %v651_v32 = vpop.f32.mrb[6].mxu0 }
 0x135   :  { %v372_v33 = vpack.c.bf16 %v651_v32, %v650_v30  ;;  %v274_v34 = vpop.f32.mrb[7].mxu0 }
 0x136   :  { %v371_v35 = vpack.c.bf16 %v274_v34, %v271_v31 }
 0x138   :  { %680 = vmatprep.mubr.bf16.mxu1 %v371_v35 }
 0x139   :  { %681 = vmatmul.mubr.bf16.gmra.mrb[4].mxu1 %v372_v33 }
 0x13a   :  { %v654_v36 = vpop.f32.mrb[8].mxu0 }
 0x13b   :  { %v287_v37 = vpop.f32.mrb[9].mxu0 }
 0x13c   :  { %v655_v38 = vpop.f32.mrb[10].mxu0 }
 0x13d   :  { %v374_v39 = vpack.c.bf16 %v655_v38, %v654_v36  ;;  %v290_v40 = vpop.f32.mrb[11].mxu0 }
 0x13e   :  { %v373_v41 = vpack.c.bf16 %v290_v40, %v287_v37 }
 0x140   :  { %684 = vmatprep.mubr.bf16.mxu1 %v373_v41 }
 0x141   :  { %685 = vmatmul.mubr.bf16.gmra.mrb[8].mxu1 %v374_v39 }
 0x142   :  { %v658_v42 = vpop.f32.mrb[12].mxu0 }
 0x143   :  { %v303_v43 = vpop.f32.mrb[13].mxu0 }
 0x144   :  { %v659_v44 = vpop.f32.mrb[14].mxu0 }
 0x145   :  { %v376_v45 = vpack.c.bf16 %v659_v44, %v658_v42  ;;  %v306_v46 = vpop.f32.mrb[15].mxu0 }
 0x146   :  { %v375_v47 = vpack.c.bf16 %v306_v46, %v303_v43 }
 0x148   :  { %688 = vmatprep.mubr.bf16.mxu1 %v375_v47 }
 0x149   :  { %689 = vmatmul.mubr.bf16.gmra.mrb[12].mxu1 %v376_v45 }
 0x204   :  { %v678_v48 = vpop.f32.mrb[0].mxu1 }
 0x205   :  { %540 = vst [vmem:[#allocation9 + $0x10] sm:$0xff] %v678_v48  ;;  %v475_v49 = vpop.f32.mrb[1].mxu1 }
 0x206   :  { %538 = vst [vmem:[#allocation9] sm:$0xff] %v475_v49  ;;  %v679_v50 = vpop.f32.mrb[2].mxu1 }
 0x207   :  { %541 = vst [vmem:[#allocation9 + $0x18] sm:$0xff] %v679_v50  ;;  %v478_v51 = vpop.f32.mrb[3].mxu1 }
 0x208   :  { %539 = vst [vmem:[#allocation9 + $0x8] sm:$0xff] %v478_v51 }
 0x20c   :  { %v682_v52 = vpop.f32.mrb[4].mxu1 }
 0x20d   :  { %544 = vst [vmem:[#allocation9 + $0x30] sm:$0xff] %v682_v52  ;;  %v491_v53 = vpop.f32.mrb[5].mxu1 }
 0x20e   :  { %542 = vst [vmem:[#allocation9 + $0x20] sm:$0xff] %v491_v53  ;;  %v683_v54 = vpop.f32.mrb[6].mxu1 }
 0x20f   :  { %545 = vst [vmem:[#allocation9 + $0x38] sm:$0xff] %v683_v54  ;;  %v494_v55 = vpop.f32.mrb[7].mxu1 }
 0x210   :  { %543 = vst [vmem:[#allocation9 + $0x28] sm:$0xff] %v494_v55 }
 0x214   :  { %v686_v56 = vpop.f32.mrb[8].mxu1 }
 0x215   :  { %548 = vst [vmem:[#allocation9 + $0x50] sm:$0xff] %v686_v56  ;;  %v507_v57 = vpop.f32.mrb[9].mxu1 }
 0x216   :  { %546 = vst [vmem:[#allocation9 + $0x40] sm:$0xff] %v507_v57  ;;  %v687_v58 = vpop.f32.mrb[10].mxu1 }
 0x217   :  { %549 = vst [vmem:[#allocation9 + $0x58] sm:$0xff] %v687_v58  ;;  %v510_v59 = vpop.f32.mrb[11].mxu1 }
 0x218   :  { %547 = vst [vmem:[#allocation9 + $0x48] sm:$0xff] %v510_v59 }
 0x21c   :  { %v690_v60 = vpop.f32.mrb[12].mxu1 }
 0x21d   :  { %552 = vst [vmem:[#allocation9 + $0x70] sm:$0xff] %v690_v60  ;;  %v523_v61 = vpop.f32.mrb[13].mxu1 }
 0x21e   :  { %550 = vst [vmem:[#allocation9 + $0x60] sm:$0xff] %v523_v61  ;;  %v691_v62 = vpop.f32.mrb[14].mxu1 }
 0x21f   :  { %553 = vst [vmem:[#allocation9 + $0x78] sm:$0xff] %v691_v62  ;;  %v526_v63 = vpop.f32.mrb[15].mxu1 }
 0x220   :  { %551 = vst [vmem:[#allocation9 + $0x68] sm:$0xff] %v526_v63 }
 0x221   :  { %801 = shalt.err (!%p798_p0)
}
 0x222   :  { %s802_s25 = scalar_lea.hbm %s913_s3, 2048 }
 0x223   :  { %p803_p1 = scmp.ne.s32.totalorder %s913_s3, %s802_s25  ;;  %p806_p2 = scmp.lt.u32.totalorder %s802_s25, %s913_s3 }
 0x225   :  { %p808_p3 = pnand %p806_p2, %p803_p1 }
 0x227   :  { %811 = shalt.err (!%p808_p3)
}
 0x228   :  { %s824_s30 = smov 128   ;;  %s825_s4 = smov 8  }
 0x229   :  { %565 = dma.vmem_to_hbm [thread:$0]  %s560_s21, 2048, %s913_s3, [#allocation5], %s824_s30, %s824_s30, %s825_s4  }
 0x22a   :  { %816 = dma.done.wait [#allocation5], 2048  }
 0x22b   :  { %817 = vsyncadd [#allocation5], 4294965248 }
 0x22c   :  { %569 = vsyncpa [#allocation4], 1 }
 0x22d   :  { %570 = vsyncpa [#allocation7], 1 }
 0x22e   :  { %571 = vsyncpa [#allocation5], 1 }

</bundles_post_ra>
